<compile_context>
chip_gen: v7x
topology: tpu7x:2x2x1
jax: 0.10.0
libtpu: 0.0.40
codegen_flags: <defaults>
</compile_context>

<pallas_src>
import functools

import jax
import jax.numpy as jnp
from jax.experimental import pallas as pl
from jax.experimental.pallas import tpu as pltpu


_LANE = 128


def _round_up(v, m):
    return ((v + m - 1) // m) * m


def _pad2(x, rows, cols):
    r, c = x.shape
    return jnp.pad(x, ((0, rows - r), (0, cols - c)))


# ----------------------------------------------------------------------------
# Kernel 1: fused backbone projection + predict head; grid step = branch (q, k)
# ----------------------------------------------------------------------------
def _branch_kernel(x_ref, wb_ref, w1_ref, g_ref, b_ref, w2_ref, b2_ref, o_ref):
    x = x_ref[0]                                                       # (N, IF) bf16
    feat = jnp.dot(x, wb_ref[0], preferred_element_type=jnp.float32)   # (N, F)  f32
    h = jnp.dot(feat.astype(jnp.bfloat16), w1_ref[0],
                preferred_element_type=jnp.float32)                    # (N, HP) f32
    # BatchNorm1d, training mode: biased batch statistics, eps=1e-5 (f32 on VPU).
    mean = jnp.mean(h, axis=0, keepdims=True)
    var = jnp.mean(jnp.square(h - mean), axis=0, keepdims=True)
    h = (h - mean) * jax.lax.rsqrt(var + 1e-5)
    h = h * g_ref[0] + b_ref[0]
    h = jnp.maximum(h, 0.0)                                            # ReLU
    z = jnp.dot(h.astype(jnp.bfloat16), w2_ref[0],
                preferred_element_type=jnp.float32) + b2_ref[0]
    # F.normalize(z, dim=1) == z * rsqrt(max(||z||^2, 1e-24))  (EUP rsqrt, no divide)
    ss = jnp.sum(z * z, axis=1, keepdims=True)
    o_ref[0] = z * jax.lax.rsqrt(jnp.maximum(ss, 1e-24))


def pallas_branches(x_all, wb_all, w1_all, g_all, b_all, w2_all, b2_all):
    nbr, n, in_flat = x_all.shape
    feat = wb_all.shape[2]
    hp = w1_all.shape[2]
    return pl.pallas_call(
        _branch_kernel,
        grid=(nbr,),
        out_shape=jax.ShapeDtypeStruct((nbr, n, hp), jnp.float32),
        in_specs=[
            pl.BlockSpec((1, n, in_flat), lambda i: (i, 0, 0)),
            pl.BlockSpec((1, in_flat, feat), lambda i: (i, 0, 0)),
            pl.BlockSpec((1, feat, hp), lambda i: (i, 0, 0)),
            pl.BlockSpec((1, 1, hp), lambda i: (i, 0, 0)),
            pl.BlockSpec((1, 1, hp), lambda i: (i, 0, 0)),
            pl.BlockSpec((1, hp, hp), lambda i: (i, 0, 0)),
            pl.BlockSpec((1, 1, hp), lambda i: (i, 0, 0)),
        ],
        out_specs=pl.BlockSpec((1, n, hp), lambda i: (i, 0, 0)),
        compiler_params=pltpu.CompilerParams(
            dimension_semantics=("parallel",)),  # branches are independent
    )(x_all, wb_all, w1_all, g_all, b_all, w2_all, b2_all)


# ----------------------------------------------------------------------------
# Kernel 2: contrastive logits (lane-dense output) + in-kernel queue enqueue
# ----------------------------------------------------------------------------
def _logits_enqueue_kernel(q_ref, k_ref, queue_ref, ptr_ref,
                           logits_ref, queue_out_ref, *, inv_t, nb):
    q = q_ref[...]
    k = k_ref[...]
    queue = queue_ref[...]
    # l_pos = einsum('nc,nc->n'); l_neg = einsum('nc,kc->nk') with no transpose.
    l_pos = jnp.sum(q * k, axis=1, keepdims=True)                        # (N, 1)
    l_neg = jax.lax.dot_general(q, queue, (((1,), (1,)), ((), ())),
                                preferred_element_type=jnp.float32)      # (N, KP)
    # Lane-dense (N, KP) logits slab: col 0 = l_pos, cols 1..K = l_neg, rest 0.
    shifted = pltpu.roll(l_neg, shift=1, axis=1)
    col = jax.lax.broadcasted_iota(jnp.int32, shifted.shape, 1)
    logits_ref[...] = jnp.where(col == 0, l_pos, shifted) * inv_t
    # Dequeue & enqueue: rows [ptr, ptr+nb) <- k.  (Logits above used the queue
    # BEFORE the update, matching torch.)  queue_out is aliased to the queue
    # input, so no full-buffer copy happens at the XLA level.
    ptr = ptr_ref[0]
    row = jax.lax.broadcasted_iota(jnp.int32, queue.shape, 0)
    new_queue = queue
    for i in range(nb):   # tiny static unroll; select avoids dynamic masked stores
        new_queue = jnp.where(row == ptr + i, k[i:i + 1, :], new_queue)
    queue_out_ref[...] = new_queue


def pallas_logits_and_enqueue(q, k, queue, queue_ptr, inv_t):
    n, hp = q.shape
    kp = queue.shape[0]
    kernel = functools.partial(_logits_enqueue_kernel, inv_t=float(inv_t), nb=n)
    return pl.pallas_call(
        kernel,
        grid=(1,),
        out_shape=(jax.ShapeDtypeStruct((n, kp), jnp.float32),
                   jax.ShapeDtypeStruct((kp, hp), jnp.float32)),
        in_specs=[pl.BlockSpec((n, hp), lambda i: (0, 0)),
                  pl.BlockSpec((n, hp), lambda i: (0, 0)),
                  pl.BlockSpec((kp, hp), lambda i: (0, 0)),
                  pl.BlockSpec(memory_space=pltpu.MemorySpace.SMEM)],
        out_specs=(pl.BlockSpec((n, kp), lambda i: (0, 0)),
                   pl.BlockSpec((kp, hp), lambda i: (0, 0))),
        input_output_aliases={2: 1},   # queue input aliases updated-queue output
    )(q, k, queue, queue_ptr)


# ----------------------------------------------------------------------------
# Pure jitted forward (EMA, ShuffleBN, both fused Pallas calls)
# ----------------------------------------------------------------------------
def _mocov2_forward(params_q, params_k, queue, queue_ptr,
                    k_img, q_img, k_bbox, q_bbox, shuffle_key,
                    *, m, inv_t, K):
    # TODO(synk): real backbones + roi_align replaced by a linear projection.
    del k_bbox, q_bbox
    nb = k_img.shape[0]

    # Momentum EMA update of the full key branch (encoder + predictor).
    ema = lambda pk, pq: pk * m + pq * (1.0 - m)
    params_k = jax.tree_util.tree_map(ema, params_k, params_q)

    # ShuffleBN permutation / reverse permutation.
    shuffle_ids = jax.random.permutation(shuffle_key, nb)
    reverse_ids = jnp.argsort(shuffle_ids)

    q_flat = q_img.reshape(nb, -1)
    k_flat = k_img[shuffle_ids].reshape(nb, -1)

    # Stack query/key operands and cast MXU inputs to bf16 at the call boundary
    # (master params stay f32; BN/normalize math stays f32 inside the kernel).
    x_all = jnp.stack([q_flat, k_flat]).astype(jnp.bfloat16)
    wb_all = jnp.stack([params_q["backbone"], params_k["backbone"]]).astype(jnp.bfloat16)
    w1_all = jnp.stack([params_q["w1"], params_k["w1"]]).astype(jnp.bfloat16)
    w2_all = jnp.stack([params_q["w2"], params_k["w2"]]).astype(jnp.bfloat16)
    g_all = jnp.stack([params_q["gamma"], params_k["gamma"]])
    b_all = jnp.stack([params_q["beta"], params_k["beta"]])
    b2_all = jnp.stack([params_q["b2"], params_k["b2"]])

    qk = pallas_branches(x_all, wb_all, w1_all, g_all, b_all, w2_all, b2_all)
    q = qk[0]                                        # (nb, HP), pad cols are 0
    k = jax.lax.stop_gradient(qk[1][reverse_ids])    # un-shuffle key features

    logits_pad, new_queue = pallas_logits_and_enqueue(q, k, queue, queue_ptr, inv_t)
    logits = logits_pad[:, : 1 + K]                  # real (nb, 1 + K) logits
    labels = jnp.zeros((nb,), jnp.int32)
    new_ptr = (queue_ptr + nb) % K
    return logits, labels, params_k, new_queue, new_ptr


# ----------------------------------------------------------------------------
# MOCOv2 wrapper
# ----------------------------------------------------------------------------
class MOCOv2Pallas:
    def __init__(self, rng, in_flat, hidden_dim=32, feat_dim=256,
                 m=0.99, T=0.01, K=64):
        assert in_flat % _LANE == 0 and feat_dim % _LANE == 0
        self.feat_dim = feat_dim
        self.hidden_dim = hidden_dim
        self.m = m
        self.T = T
        self.K = K
        self.hp = _round_up(hidden_dim, _LANE)   # lane-dense padded hidden dim
        self.kp = _round_up(K, _LANE)            # padded queue rows

        k0, k1, k2, k3, k4 = jax.random.split(rng, 5)

        # Backbone stand-in (query).  Head params stored zero-padded to the
        # lane-dense sizes; padding is inert (pad activation columns stay 0).
        backbone = jax.random.normal(k0, (in_flat, feat_dim), jnp.float32) * 0.02
        w1 = jax.random.normal(k1, (feat_dim, hidden_dim), jnp.float32) * 0.02
        w2 = jax.random.normal(k2, (hidden_dim, hidden_dim), jnp.float32) * 0.02
        b2 = jax.random.normal(k3, (1, hidden_dim), jnp.float32) * 0.02
        self.params_q = {
            "backbone": backbone,
            "w1": _pad2(w1, feat_dim, self.hp),
            "gamma": _pad2(jnp.ones((1, hidden_dim), jnp.float32), 1, self.hp),
            "beta": jnp.zeros((1, self.hp), jnp.float32),
            "w2": _pad2(w2, self.hp, self.hp),
            "b2": _pad2(b2, 1, self.hp),
        }
        # Key branch starts as an exact copy (param_k <- param_q).  NOTE: shallow
        # dict copy is safe only because jnp arrays are immutable.
        self.params_k = dict(self.params_q)

        # Queue buffer: randn(K, hidden), row-normalized, zero-padded.
        queue = jax.random.normal(k4, (K, hidden_dim), jnp.float32)
        queue = queue / jnp.maximum(
            jnp.linalg.norm(queue, axis=1, keepdims=True), 1e-12)
        self.queue = _pad2(queue, self.kp, self.hp)
        self.queue_ptr = jnp.zeros((1,), jnp.int32)

        self._fwd = jax.jit(functools.partial(
            _mocov2_forward, m=float(m), inv_t=float(1.0 / T), K=int(K)))

    def forward(self, k_img, q_img, k_bbox, q_bbox, shuffle_rng):
        nb = k_img.shape[0]
        assert self.K % nb == 0
        logits, labels, params_k, queue, ptr = self._fwd(
            self.params_q, self.params_k, self.queue, self.queue_ptr,
            k_img, q_img, k_bbox, q_bbox, shuffle_rng)
        self.params_k = params_k
        self.queue = queue
        self.queue_ptr = ptr
        return logits, labels


# ----------------------------------------------------------------------------
if __name__ == "__main__":
    root = jax.random.PRNGKey(0)
    k_data, k_params, k_shuffle = jax.random.split(root, 3)
    kd0, kd1, kd2, kd3 = jax.random.split(k_data, 4)

    # Small shapes consistent with the module's forward.
    N, C, H, W = 2, 4, 16, 16
    k_img = jax.random.normal(kd0, (N, C, H, W), jnp.float32)   # NCHW like torch
    q_img = jax.random.normal(kd1, (N, C, H, W), jnp.float32)
    k_bbox = jax.random.uniform(kd2, (N, 1, 4), jnp.float32) * 16.0
    q_bbox = jax.random.uniform(kd3, (N, 1, 4), jnp.float32) * 16.0

    model = MOCOv2Pallas(k_params, in_flat=C * H * W,
                         hidden_dim=32, feat_dim=256, m=0.99, T=0.01, K=64)

    logits, labels = model.forward(k_img, q_img, k_bbox, q_bbox, k_shuffle)
    jax.block_until_ready((logits, labels))
    assert logits.shape == (N, 1 + model.K) and labels.shape == (N,)
    assert bool(jnp.all(jnp.isfinite(logits)))
    print("KERNEL_OK")
</pallas_src>

<mosaic_0001>
module attributes {stable_mosaic.version = 11 : i64} {
  func.func @_branch_kernel(%arg0: i32, %arg1: memref<1x2x1024xbf16, #tpu.memory_space<vmem>>, %arg2: memref<1x1024x256xbf16, #tpu.memory_space<vmem>>, %arg3: memref<1x256x128xbf16, #tpu.memory_space<vmem>>, %arg4: memref<1x1x128xf32, #tpu.memory_space<vmem>>, %arg5: memref<1x1x128xf32, #tpu.memory_space<vmem>>, %arg6: memref<1x128x128xbf16, #tpu.memory_space<vmem>>, %arg7: memref<1x1x128xf32, #tpu.memory_space<vmem>>, %arg8: memref<1x2x128xf32, #tpu.memory_space<vmem>>) attributes {dimension_semantics = [#tpu.dimension_semantics<parallel>], iteration_bounds = array<i64: 2>, scalar_prefetch = 0 : i64, scratch_operands = 0 : i64, tpu.core_type = #tpu.core_type<tc>, window_params = [{transform_indices = @transform_0, window_bounds = array<i64: 1, 2, 1024>}, {transform_indices = @transform_1, window_bounds = array<i64: 1, 1024, 256>}, {transform_indices = @transform_2, window_bounds = array<i64: 1, 256, 128>}, {transform_indices = @transform_3, window_bounds = array<i64: 1, 1, 128>}, {transform_indices = @transform_4, window_bounds = array<i64: 1, 1, 128>}, {transform_indices = @transform_5, window_bounds = array<i64: 1, 128, 128>}, {transform_indices = @transform_6, window_bounds = array<i64: 1, 1, 128>}, {transform_indices = @transform_7, window_bounds = array<i64: 1, 2, 128>}]} {
    %c0 = arith.constant 0 : index
    %c0_0 = arith.constant 0 : index
    %c0_1 = arith.constant 0 : index
    %0 = vector.load %arg1[%c0, %c0_0, %c0_1] : memref<1x2x1024xbf16, #tpu.memory_space<vmem>>, vector<1x2x1024xbf16>
    %1 = vector.shape_cast %0 : vector<1x2x1024xbf16> to vector<2x1024xbf16>
    %c0_2 = arith.constant 0 : index
    %c0_3 = arith.constant 0 : index
    %c0_4 = arith.constant 0 : index
    %2 = vector.load %arg2[%c0_2, %c0_3, %c0_4] : memref<1x1024x256xbf16, #tpu.memory_space<vmem>>, vector<1x1024x256xbf16>
    %3 = vector.shape_cast %2 : vector<1x1024x256xbf16> to vector<1024x256xbf16>
    %cst = arith.constant dense<0.000000e+00> : vector<2x256xf32>
    %4 = tpu.matmul %1, %3, %cst {dimension_numbers = #tpu.dot_dimension_numbers<[1], [0], [0], [1], [0, 0, 1, 1], [], []>} : vector<2x1024xbf16>, vector<1024x256xbf16>, vector<2x256xf32> -> vector<2x256xf32>
    %5 = arith.truncf %4 : vector<2x256xf32> to vector<2x256xbf16>
    %c0_5 = arith.constant 0 : index
    %c0_6 = arith.constant 0 : index
    %c0_7 = arith.constant 0 : index
    %6 = vector.load %arg3[%c0_5, %c0_6, %c0_7] : memref<1x256x128xbf16, #tpu.memory_space<vmem>>, vector<1x256x128xbf16>
    %7 = vector.shape_cast %6 : vector<1x256x128xbf16> to vector<256x128xbf16>
    %cst_8 = arith.constant dense<0.000000e+00> : vector<2x128xf32>
    %8 = tpu.matmul %5, %7, %cst_8 {dimension_numbers = #tpu.dot_dimension_numbers<[1], [0], [0], [1], [0, 0, 1, 1], [], []>} : vector<2x256xbf16>, vector<256x128xbf16>, vector<2x128xf32> -> vector<2x128xf32>
    %cst_9 = arith.constant dense<0.000000e+00> : vector<128xf32>
    %9 = vector.multi_reduction <add>, %8, %cst_9 [0] : vector<2x128xf32> to vector<128xf32>
    %10 = vector.shape_cast %9 : vector<128xf32> to vector<1x128xf32>
    %cst_10 = arith.constant 2.000000e+00 : f32
    %11 = vector.broadcast %cst_10 : f32 to vector<1x128xf32>
    %12 = arith.divf %10, %11 : vector<1x128xf32>
    %13 = vector.broadcast %12 : vector<1x128xf32> to vector<2x128xf32>
    %14 = arith.subf %8, %13 : vector<2x128xf32>
    %15 = arith.mulf %14, %14 : vector<2x128xf32>
    %cst_11 = arith.constant dense<0.000000e+00> : vector<128xf32>
    %16 = vector.multi_reduction <add>, %15, %cst_11 [0] : vector<2x128xf32> to vector<128xf32>
    %17 = vector.shape_cast %16 : vector<128xf32> to vector<1x128xf32>
    %cst_12 = arith.constant 2.000000e+00 : f32
    %18 = vector.broadcast %cst_12 : f32 to vector<1x128xf32>
    %19 = arith.divf %17, %18 : vector<1x128xf32>
    %20 = vector.broadcast %12 : vector<1x128xf32> to vector<2x128xf32>
    %21 = arith.subf %8, %20 : vector<2x128xf32>
    %cst_13 = arith.constant 9.99999974E-6 : f32
    %22 = vector.broadcast %cst_13 : f32 to vector<1x128xf32>
    %23 = arith.addf %19, %22 : vector<1x128xf32>
    %24 = math.rsqrt %23 : vector<1x128xf32>
    %25 = vector.broadcast %24 : vector<1x128xf32> to vector<2x128xf32>
    %26 = arith.mulf %21, %25 : vector<2x128xf32>
    %c0_14 = arith.constant 0 : index
    %c0_15 = arith.constant 0 : index
    %c0_16 = arith.constant 0 : index
    %27 = vector.load %arg4[%c0_14, %c0_15, %c0_16] : memref<1x1x128xf32, #tpu.memory_space<vmem>>, vector<1x1x128xf32>
    %28 = vector.shape_cast %27 : vector<1x1x128xf32> to vector<1x128xf32>
    %29 = vector.broadcast %28 : vector<1x128xf32> to vector<2x128xf32>
    %30 = arith.mulf %26, %29 : vector<2x128xf32>
    %c0_17 = arith.constant 0 : index
    %c0_18 = arith.constant 0 : index
    %c0_19 = arith.constant 0 : index
    %31 = vector.load %arg5[%c0_17, %c0_18, %c0_19] : memref<1x1x128xf32, #tpu.memory_space<vmem>>, vector<1x1x128xf32>
    %32 = vector.shape_cast %31 : vector<1x1x128xf32> to vector<1x128xf32>
    %33 = vector.broadcast %32 : vector<1x128xf32> to vector<2x128xf32>
    %34 = arith.addf %30, %33 : vector<2x128xf32>
    %cst_20 = arith.constant 0.000000e+00 : f32
    %35 = vector.broadcast %cst_20 : f32 to vector<2x128xf32>
    %36 = arith.maximumf %34, %35 : vector<2x128xf32>
    %37 = arith.truncf %36 : vector<2x128xf32> to vector<2x128xbf16>
    %c0_21 = arith.constant 0 : index
    %c0_22 = arith.constant 0 : index
    %c0_23 = arith.constant 0 : index
    %38 = vector.load %arg6[%c0_21, %c0_22, %c0_23] : memref<1x128x128xbf16, #tpu.memory_space<vmem>>, vector<1x128x128xbf16>
    %39 = vector.shape_cast %38 : vector<1x128x128xbf16> to vector<128x128xbf16>
    %cst_24 = arith.constant dense<0.000000e+00> : vector<2x128xf32>
    %40 = tpu.matmul %37, %39, %cst_24 {dimension_numbers = #tpu.dot_dimension_numbers<[1], [0], [0], [1], [0, 0, 1, 1], [], []>} : vector<2x128xbf16>, vector<128x128xbf16>, vector<2x128xf32> -> vector<2x128xf32>
    %c0_25 = arith.constant 0 : index
    %c0_26 = arith.constant 0 : index
    %c0_27 = arith.constant 0 : index
    %41 = vector.load %arg7[%c0_25, %c0_26, %c0_27] : memref<1x1x128xf32, #tpu.memory_space<vmem>>, vector<1x1x128xf32>
    %42 = vector.shape_cast %41 : vector<1x1x128xf32> to vector<1x128xf32>
    %43 = vector.broadcast %42 : vector<1x128xf32> to vector<2x128xf32>
    %44 = arith.addf %40, %43 : vector<2x128xf32>
    %45 = arith.mulf %44, %44 : vector<2x128xf32>
    %cst_28 = arith.constant dense<0.000000e+00> : vector<2xf32>
    %46 = vector.multi_reduction <add>, %45, %cst_28 [1] : vector<2x128xf32> to vector<2xf32>
    %47 = vector.shape_cast %46 : vector<2xf32> to vector<2x1xf32>
    %cst_29 = arith.constant 1.000000e-24 : f32
    %48 = vector.broadcast %cst_29 : f32 to vector<2x1xf32>
    %49 = arith.maximumf %47, %48 : vector<2x1xf32>
    %50 = math.rsqrt %49 : vector<2x1xf32>
    %51 = vector.broadcast %50 : vector<2x1xf32> to vector<2x128xf32>
    %52 = arith.mulf %44, %51 : vector<2x128xf32>
    %c0_30 = arith.constant 0 : index
    %c0_31 = arith.constant 0 : index
    %c0_32 = arith.constant 0 : index
    %53 = vector.load %arg8[%c0_30, %c0_31, %c0_32] : memref<1x2x128xf32, #tpu.memory_space<vmem>>, vector<1x2x128xf32>
    %54 = vector.shape_cast %53 : vector<1x2x128xf32> to vector<2x128xf32>
    %55 = vector.shape_cast %52 : vector<2x128xf32> to vector<1x2x128xf32>
    tpu.vector_store %arg8[%c0_30, %c0_31, %c0_32], %55 {strides = array<i32>} : memref<1x2x128xf32, #tpu.memory_space<vmem>>, vector<1x2x128xf32>,
    return
  }
  func.func @transform_0(%arg0: i32) -> (i32, i32, i32) {
    %c0_i32 = arith.constant 0 : i32
    %c0_i32_0 = arith.constant 0 : i32
    %c0_i32_1 = arith.constant 0 : i32
    return %arg0, %c0_i32, %c0_i32_0 : i32, i32, i32
  }
  func.func @transform_1(%arg0: i32) -> (i32, i32, i32) {
    %c0_i32 = arith.constant 0 : i32
    %c0_i32_0 = arith.constant 0 : i32
    %c0_i32_1 = arith.constant 0 : i32
    return %arg0, %c0_i32, %c0_i32_0 : i32, i32, i32
  }
  func.func @transform_2(%arg0: i32) -> (i32, i32, i32) {
    %c0_i32 = arith.constant 0 : i32
    %c0_i32_0 = arith.constant 0 : i32
    %c0_i32_1 = arith.constant 0 : i32
    return %arg0, %c0_i32, %c0_i32_0 : i32, i32, i32
  }
  func.func @transform_3(%arg0: i32) -> (i32, i32, i32) {
    %c0_i32 = arith.constant 0 : i32
    %c0_i32_0 = arith.constant 0 : i32
    %c0_i32_1 = arith.constant 0 : i32
    return %arg0, %c0_i32, %c0_i32_0 : i32, i32, i32
  }
  func.func @transform_4(%arg0: i32) -> (i32, i32, i32) {
    %c0_i32 = arith.constant 0 : i32
    %c0_i32_0 = arith.constant 0 : i32
    %c0_i32_1 = arith.constant 0 : i32
    return %arg0, %c0_i32, %c0_i32_0 : i32, i32, i32
  }
  func.func @transform_5(%arg0: i32) -> (i32, i32, i32) {
    %c0_i32 = arith.constant 0 : i32
    %c0_i32_0 = arith.constant 0 : i32
    %c0_i32_1 = arith.constant 0 : i32
    return %arg0, %c0_i32, %c0_i32_0 : i32, i32, i32
  }
  func.func @transform_6(%arg0: i32) -> (i32, i32, i32) {
    %c0_i32 = arith.constant 0 : i32
    %c0_i32_0 = arith.constant 0 : i32
    %c0_i32_1 = arith.constant 0 : i32
    return %arg0, %c0_i32, %c0_i32_0 : i32, i32, i32
  }
  func.func @transform_7(%arg0: i32) -> (i32, i32, i32) {
    %c0_i32 = arith.constant 0 : i32
    %c0_i32_0 = arith.constant 0 : i32
    %c0_i32_1 = arith.constant 0 : i32
    return %arg0, %c0_i32, %c0_i32_0 : i32, i32, i32
  }
}

module attributes {stable_mosaic.version = 11 : i64} {
  func.func @_logits_enqueue_kernel(%arg0: i32, %arg1: memref<2x128xf32, #tpu.memory_space<vmem>>, %arg2: memref<2x128xf32, #tpu.memory_space<vmem>>, %arg3: memref<128x128xf32, #tpu.memory_space<vmem>>, %arg4: memref<1xi32, #tpu.memory_space<smem>>, %arg5: memref<2x128xf32, #tpu.memory_space<vmem>>, %arg6: memref<128x128xf32, #tpu.memory_space<vmem>>) attributes {dimension_semantics = [#tpu.dimension_semantics<arbitrary>], iteration_bounds = array<i64: 1>, scalar_prefetch = 0 : i64, scratch_operands = 0 : i64, tpu.core_type = #tpu.core_type<tc>, window_params = [{pipeline_mode = #tpu.pipeline_mode<synchronous>, transform_indices = @transform_0, window_bounds = array<i64: 2, 128>}, {pipeline_mode = #tpu.pipeline_mode<synchronous>, transform_indices = @transform_1, window_bounds = array<i64: 2, 128>}, {pipeline_mode = #tpu.pipeline_mode<synchronous>, transform_indices = @transform_2, window_bounds = array<i64: 128, 128>}, {transform_indices = @transform_3, window_bounds = array<i64: 1>}, {pipeline_mode = #tpu.pipeline_mode<synchronous>, transform_indices = @transform_4, window_bounds = array<i64: 2, 128>}, {pipeline_mode = #tpu.pipeline_mode<synchronous>, transform_indices = @transform_5, window_bounds = array<i64: 128, 128>}]} {
    %c0 = arith.constant 0 : index
    %c0_0 = arith.constant 0 : index
    %0 = vector.load %arg1[%c0, %c0_0] : memref<2x128xf32, #tpu.memory_space<vmem>>, vector<2x128xf32>
    %c0_1 = arith.constant 0 : index
    %c0_2 = arith.constant 0 : index
    %1 = vector.load %arg2[%c0_1, %c0_2] : memref<2x128xf32, #tpu.memory_space<vmem>>, vector<2x128xf32>
    %c0_3 = arith.constant 0 : index
    %c0_4 = arith.constant 0 : index
    %2 = vector.load %arg3[%c0_3, %c0_4] : memref<128x128xf32, #tpu.memory_space<vmem>>, vector<128x128xf32>
    %3 = arith.mulf %0, %1 : vector<2x128xf32>
    %cst = arith.constant dense<0.000000e+00> : vector<2xf32>
    %4 = vector.multi_reduction <add>, %3, %cst [1] : vector<2x128xf32> to vector<2xf32>
    %5 = vector.shape_cast %4 : vector<2xf32> to vector<2x1xf32>
    %cst_5 = arith.constant dense<0.000000e+00> : vector<2x128xf32>
    %6 = tpu.matmul %0, %2, %cst_5 {dimension_numbers = #tpu.dot_dimension_numbers<[1], [1], [0], [0], [0, 0, 1, 0], [], []>} : vector<2x128xf32>, vector<128x128xf32>, vector<2x128xf32> -> vector<2x128xf32>
    %c1_i32 = arith.constant 1 : i32
    %7 = tpu.dynamic_rotate %6 by %c1_i32 dim 1 : vector<2x128xf32>, i32 -> vector<2x128xf32>
    %8 = tpu.iota {dimensions = array<i32: 1>} : vector<2x128xi32>
    %c0_i32 = arith.constant 0 : i32
    %9 = vector.broadcast %c0_i32 : i32 to vector<2x128xi32>
    %10 = arith.cmpi eq, %8, %9 : vector<2x128xi32>
    %11 = vector.shape_cast %5 : vector<2x1xf32> to vector<2x1xf32>
    %12 = vector.broadcast %11 : vector<2x1xf32> to vector<2x128xf32>
    %13 = arith.select %10, %12, %7 : vector<2x128xi1>, vector<2x128xf32>
    %cst_6 = arith.constant 1.000000e+02 : f32
    %14 = vector.broadcast %cst_6 : f32 to vector<2x128xf32>
    %15 = arith.mulf %13, %14 : vector<2x128xf32>
    %c0_7 = arith.constant 0 : index
    %c0_8 = arith.constant 0 : index
    %16 = vector.load %arg5[%c0_7, %c0_8] : memref<2x128xf32, #tpu.memory_space<vmem>>, vector<2x128xf32>
    tpu.vector_store %arg5[%c0_7, %c0_8], %15 {strides = array<i32>} : memref<2x128xf32, #tpu.memory_space<vmem>>, vector<2x128xf32>,
    %c0_9 = arith.constant 0 : index
    %17 = memref.load %arg4[%c0_9] : memref<1xi32, #tpu.memory_space<smem>>
    %18 = tpu.iota {dimensions = array<i32: 0>} : vector<128x128xi32>
    %c0_i32_10 = arith.constant 0 : i32
    %19 = arith.addi %17, %c0_i32_10 : i32
    %20 = vector.broadcast %19 : i32 to vector<128x128xi32>
    %21 = arith.cmpi eq, %18, %20 : vector<128x128xi32>
    %22 = vector.extract_strided_slice %1 {offsets = [0, 0], sizes = [1, 128], strides = [1, 1]} : vector<2x128xf32> to vector<1x128xf32>
    %23 = vector.shape_cast %22 : vector<1x128xf32> to vector<1x128xf32>
    %24 = vector.broadcast %23 : vector<1x128xf32> to vector<128x128xf32>
    %25 = arith.select %21, %24, %2 : vector<128x128xi1>, vector<128x128xf32>
    %c1_i32_11 = arith.constant 1 : i32
    %26 = arith.addi %17, %c1_i32_11 : i32
    %27 = vector.broadcast %26 : i32 to vector<128x128xi32>
    %28 = arith.cmpi eq, %18, %27 : vector<128x128xi32>
    %29 = vector.extract_strided_slice %1 {offsets = [1, 0], sizes = [1, 128], strides = [1, 1]} : vector<2x128xf32> to vector<1x128xf32>
    %30 = vector.shape_cast %29 : vector<1x128xf32> to vector<1x128xf32>
    %31 = vector.broadcast %30 : vector<1x128xf32> to vector<128x128xf32>
    %32 = arith.select %28, %31, %25 : vector<128x128xi1>, vector<128x128xf32>
    %c0_12 = arith.constant 0 : index
    %c0_13 = arith.constant 0 : index
    %33 = vector.load %arg6[%c0_12, %c0_13] : memref<128x128xf32, #tpu.memory_space<vmem>>, vector<128x128xf32>
    tpu.vector_store %arg6[%c0_12, %c0_13], %32 {strides = array<i32>} : memref<128x128xf32, #tpu.memory_space<vmem>>, vector<128x128xf32>,
    return
  }
  func.func @transform_0(%arg0: i32) -> (i32, i32) {
    %c0_i32 = arith.constant 0 : i32
    %c0_i32_0 = arith.constant 0 : i32
    %c0_i32_1 = arith.constant 0 : i32
    return %c0_i32, %c0_i32_0 : i32, i32
  }
  func.func @transform_1(%arg0: i32) -> (i32, i32) {
    %c0_i32 = arith.constant 0 : i32
    %c0_i32_0 = arith.constant 0 : i32
    %c0_i32_1 = arith.constant 0 : i32
    return %c0_i32, %c0_i32_0 : i32, i32
  }
  func.func @transform_2(%arg0: i32) -> (i32, i32) {
    %c0_i32 = arith.constant 0 : i32
    %c0_i32_0 = arith.constant 0 : i32
    %c0_i32_1 = arith.constant 0 : i32
    return %c0_i32, %c0_i32_0 : i32, i32
  }
  func.func @transform_3(%arg0: i32) -> i32 {
    %c0_i32 = arith.constant 0 : i32
    %c0_i32_0 = arith.constant 0 : i32
    return %c0_i32 : i32
  }
  func.func @transform_4(%arg0: i32) -> (i32, i32) {
    %c0_i32 = arith.constant 0 : i32
    %c0_i32_0 = arith.constant 0 : i32
    %c0_i32_1 = arith.constant 0 : i32
    return %c0_i32, %c0_i32_0 : i32, i32
  }
  func.func @transform_5(%arg0: i32) -> (i32, i32) {
    %c0_i32 = arith.constant 0 : i32
    %c0_i32_0 = arith.constant 0 : i32
    %c0_i32_1 = arith.constant 0 : i32
    return %c0_i32, %c0_i32_0 : i32, i32
  }
}

</mosaic_0001>

<bundles_post_ra>
// kernel: _mocov2_forward.3
= control target key start
LH: loop header
LB: loop body
LE: loop exit
PB: predicated region body
PF: predicated region fallthrough
CT: control target
= control target key end

     0   :  { %v116_v2 = vlaneseq  ;;  %v354_v3 = vmov 0.0|0.0   ;;  %vm355_vm0 = vmmov 0   ;;  %v356_v5 = vmov 0.0   ;;  %s780_s0 = inlined_call_operand.vmem [shape: f32[2,128], index: 0, kind: input, shape index: {}]   ;;  %s781_s1 = inlined_call_operand.vmem [shape: f32[2,128], index: 1, kind: input, shape index: {}]   ;;  %s782_s2 = inlined_call_operand.vmem [shape: f32[128,128], index: 2, kind: input, shape index: {}, may-alias: {2,5}]   ;;  %s783_s3 = inlined_call_operand.<no memory space> [shape: s32[1], index: 3, kind: input, shape index: {}]   ;;  %s784_s4 = inlined_call_operand.hbm [shape: f32[2,128], index: 4, kind: output, shape index: {0}]   ;;  %s785_s5 = inlined_call_operand.vmem [shape: f32[128,128], index: 5, kind: output, shape index: {1}, may-alias: {2,5}]  }
   0x1   :  { %v392_v0 = vld [vmem:[%s782_s2] sm:$0xff]  ;;  %v397_v1 = vld [vmem:[%s782_s2 + $0x8] sm:$0xff]  ;;  %301 = vmatprep.subr.bf16.mxu0 %v354_v3  ;;  %298 = vmatprep.mubr.msk.f32.mxu0 %vm355_vm0, %v356_v5  ;;  %v405_v6 = vld [vmem:[%s782_s2 + $0x10] sm:$0xff]  ;;  %s177_s9 = sadd.s32 1, %s783_s3  ;;  %vm40_vm1 = vcmask 1041408   ;;  %v454_v16 = vstv %s783_s3 }
   0x2   :  { %v302_v4 = vpack.c.bf16 %v397_v1, %v392_v0  ;;  %v410_v7 = vld [vmem:[%s782_s2 + $0x18] sm:$0xff]  ;;  %v416_v8 = vld [vmem:[%s782_s2 + $0x20] sm:$0xff]  ;;  %v421_v9 = vld [vmem:[%s782_s2 + $0x28] sm:$0xff]  ;;  %v429_v11 = vshrl.u32 %v116_v2, 7 }
   0x3   :  { %v426_v10 = vld [vmem:[%s782_s2 + $0x30] sm:$0xff]  ;;  %v437_v12 = vld [vmem:[%s782_s2 + $0x38] sm:$0xff]  ;;  %v442_v13 = vld [vmem:[%s780_s0] sm:$0x3] }
   0x4   :  { %303 = vmatpush3.bf16.xpose.msra.mxu0 %v302_v4  ;;  %v447_v14 = vld [vmem:[%s781_s1] sm:$0x3] }
   0x5   :  { %304 = vmatprep.subr.bf16.mxu0 %v354_v3  ;;  %v39_v15 = vmul.f32 %v447_v14, %v442_v13 }
   0x6   :  { %12 = vsyncpa [#allocation4], 0  ;;  %v305_v17 = vpack.c.bf16 %v410_v7, %v405_v6  ;;  %v308_v18 = vpack.c.bf16 %v421_v9, %v416_v8  ;;  %v460_v19 = vstv %s177_s9  ;;  %v311_v20 = vpack.c.bf16 %v437_v12, %v426_v10  ;;  %v578_v40 = vld [vmem:[%s782_s2 + $0x40] sm:$0xff]  ;;  %v32_v45 = vld [vmem:[%s782_s2 + $0x48] sm:$0xff]  ;;  %s358_s8 = smov [#allocation3]  }
   0x7   :  { %v41_v21 = vsel %vm40_vm1, %v39_v15, 0.0  ;;  %v465_v22 = vadd.s32 8, %v429_v11  ;;  %v468_v23 = vadd.s32 16, %v429_v11  ;;  %v471_v24 = vadd.s32 24, %v429_v11  ;;  %v33_v46 = vld [vmem:[%s782_s2 + $0x50] sm:$0xff]  ;;  %v34_v47 = vld [vmem:[%s782_s2 + $0x58] sm:$0xff] }
   0x8   :  { %v474_v25 = vadd.s32 32, %v429_v11  ;;  %v477_v26 = vadd.s32 40, %v429_v11  ;;  %vm141_vm2 = vcmp.eq.s32.totalorder %v429_v11, %v454_v16  ;;  %42 = vadd.xlane.f32.xlu0 %v41_v21  ;;  %v482_v27 = vadd.s32 48, %v429_v11  ;;  %v35_v52 = vld [vmem:[%s782_s2 + $0x60] sm:$0xff]  ;;  %v36_v53 = vld [vmem:[%s782_s2 + $0x68] sm:$0xff]  ;;  %v37_v54 = vld [vmem:[%s782_s2 + $0x70] sm:$0xff] }
   0x9   :  { %v485_v28 = vadd.s32 56, %v429_v11  ;;  %v488_v29 = vadd.s32 64, %v429_v11  ;;  %v491_v30 = vadd.s32 72, %v429_v11  ;;  %v494_v31 = vadd.s32 80, %v429_v11  ;;  %v38_v59 = vld [vmem:[%s782_s2 + $0x78] sm:$0xff]  ;;  %s237_s9 = sshll.u32 %s358_s8, 4  ;;  %s238_s9 = int_to_ptr.vmem [resolvable:$true] %s237_s9 }
   0xa   :  { %v497_v32 = vadd.s32 88, %v429_v11  ;;  %v500_v33 = vadd.s32 96, %v429_v11  ;;  %v503_v34 = vadd.s32 104, %v429_v11  ;;  %v507_v35 = vadd.s32 112, %v429_v11  ;;  %s330_s10 = scalar_lea.vmem %s238_s9, 32  ;;  %p335_p1 = scmp.lt.s32.totalorder %s238_s9, %s238_s9 }
   0xb   :  { %v510_v36 = vadd.s32 120, %v429_v11  ;;  %vm142_vm3 = vcmp.eq.s32.totalorder %v465_v22, %v454_v16  ;;  %vm143_vm4 = vcmp.eq.s32.totalorder %v468_v23, %v454_v16  ;;  %vm144_vm5 = vcmp.eq.s32.totalorder %v471_v24, %v454_v16  ;;  %p331_p0 = scmp.ne.s32.totalorder %s238_s9, %s330_s10  ;;  %p336_p2 = scmp.lt.s32.totalorder %s330_s10, %s330_s10 }
   0xc   :  { %306 = vmatpush3.bf16.xpose.msra.mxu0 %v305_v17  ;;  %vm145_vm6 = vcmp.eq.s32.totalorder %v474_v25, %v454_v16  ;;  %vm146_vm7 = vcmp.eq.s32.totalorder %v477_v26, %v454_v16  ;;  %v159_v37 = vsub.s32 0, %v429_v11  ;;  %vm147_vm8 = vcmp.eq.s32.totalorder %v482_v27, %v454_v16 }
   0xd   :  { %307 = vmatprep.subr.bf16.mxu0 %v354_v3  ;;  %vm148_vm9 = vcmp.eq.s32.totalorder %v485_v28, %v454_v16  ;;  %vm149_vm10 = vcmp.eq.s32.totalorder %v488_v29, %v454_v16  ;;  %vm182_vm15 = vcmp.eq.s32.totalorder %v471_v24, %v460_v19  ;;  %vm183_vm11 = vcmp.eq.s32.totalorder %v474_v25, %v460_v19  ;;  %p337_p3 = por %p336_p2, %p335_p1 }
   0xe   :  { %v160_v38 = vrot.slane %v447_v14, %v159_v37  ;;  %vm187_vm13 = vcmp.eq.s32.totalorder %v488_v29, %v460_v19  ;;  %vm188_vm14 = vcmp.eq.s32.totalorder %v491_v30, %v460_v19  ;;  %vm189_vm0 = vcmp.eq.s32.totalorder %v494_v31, %v460_v19 }
   0xf   :  { %vm190_vm1 = vcmp.eq.s32.totalorder %v497_v32, %v460_v19  ;;  %vm191_vm12 = vcmp.eq.s32.totalorder %v500_v33, %v460_v19  ;;  %v197_v51 = vsub.s32 1, %v429_v11  ;;  %v317_v21 = vpack.c.bf16 %v34_v47, %v33_v46  ;;  %p338_p4 = pnand %p337_p3, %p331_p0 }
  0x10   :  { %v161_v39 = vsel %vm141_vm2, %v160_v38, %v392_v0  ;;  %v162_v41 = vsel %vm142_vm3, %v160_v38, %v397_v1  ;;  %v163_v42 = vsel %vm143_vm4, %v160_v38, %v405_v6  ;;  %v164_v43 = vsel %vm144_vm5, %v160_v38, %v410_v7 }
  0x11   :  { %v165_v44 = vsel %vm145_vm6, %v160_v38, %v416_v8  ;;  %v166_v48 = vsel %vm146_vm7, %v160_v38, %v421_v9  ;;  %v167_v49 = vsel %vm147_vm8, %v160_v38, %v426_v10  ;;  %v168_v50 = vsel %vm148_vm9, %v160_v38, %v437_v12 }
  0x12   :  { %v169_v55 = vsel %vm149_vm10, %v160_v38, %v578_v40  ;;  %vm786_vm2 = vcmp.eq.s32.totalorder %v491_v30, %v454_v16  ;;  %vm787_vm3 = vcmp.eq.s32.totalorder %v494_v31, %v454_v16  ;;  %vm788_vm4 = vcmp.eq.s32.totalorder %v497_v32, %v454_v16 }
  0x13   :  { %v170_v56 = vsel %vm786_vm2, %v160_v38, %v32_v45  ;;  %v171_v57 = vsel %vm787_vm3, %v160_v38, %v33_v46  ;;  %v172_v58 = vsel %vm788_vm4, %v160_v38, %v34_v47  ;;  %vm789_vm5 = vcmp.eq.s32.totalorder %v500_v33, %v454_v16 }
  0x14   :  { %309 = vmatpush3.bf16.xpose.msra.mxu0 %v308_v18  ;;  %v173_v60 = vsel %vm789_vm5, %v160_v38, %v35_v52  ;;  %vm790_vm6 = vcmp.eq.s32.totalorder %v503_v34, %v454_v16  ;;  %vm791_vm7 = vcmp.eq.s32.totalorder %v507_v35, %v454_v16  ;;  %v198_v63 = vrot.slane %v447_v14, %v197_v51 }
  0x15   :  { %310 = vmatprep.subr.bf16.mxu0 %v354_v3  ;;  %v174_v61 = vsel %vm790_vm6, %v160_v38, %v36_v53  ;;  %v175_v62 = vsel %vm791_vm7, %v160_v38, %v37_v54  ;;  %vm792_vm8 = vcmp.eq.s32.totalorder %v510_v36, %v454_v16  ;;  %vm192_vm9 = vcmp.eq.s32.totalorder %v503_v34, %v460_v19 }
  0x16   :  { %v176_v0 = vsel %vm792_vm8, %v160_v38, %v38_v59  ;;  %vm193_vm10 = vcmp.eq.s32.totalorder %v507_v35, %v460_v19  ;;  %vm194_vm2 = vcmp.eq.s32.totalorder %v510_v36, %v460_v19  ;;  %vm793_vm3 = vcmp.eq.s32.totalorder %v429_v11, %v460_v19 }
  0x17   :  { %v199_v1 = vsel %vm793_vm3, %v198_v63, %v161_v39  ;;  %vm794_vm4 = vcmp.eq.s32.totalorder %v465_v22, %v460_v19  ;;  %vm795_vm5 = vcmp.eq.s32.totalorder %v468_v23, %v460_v19  ;;  %v202_v6 = vsel %vm182_vm15, %v198_v63, %v164_v43 }
  0x18   :  { %v200_v4 = vsel %vm794_vm4, %v198_v63, %v162_v41  ;;  %v201_v5 = vsel %vm795_vm5, %v198_v63, %v163_v42  ;;  %v203_v7 = vsel %vm183_vm11, %v198_v63, %v165_v44  ;;  %vm796_vm6 = vcmp.eq.s32.totalorder %v477_v26, %v460_v19  ;;  %215 = vst [vmem:[%s785_s5] sm:$0xff] %v199_v1 }
  0x19   :  { %v204_v8 = vsel %vm796_vm6, %v198_v63, %v166_v48  ;;  %vm797_vm7 = vcmp.eq.s32.totalorder %v482_v27, %v460_v19  ;;  %vm798_vm8 = vcmp.eq.s32.totalorder %v485_v28, %v460_v19  ;;  %216 = vst [vmem:[%s785_s5 + $0x8] sm:$0xff] %v200_v4  ;;  %217 = vst [vmem:[%s785_s5 + $0x10] sm:$0xff] %v201_v5  ;;  %v117_v27 = vand.u32 127, %v116_v2 }
  0x1a   :  { %v205_v9 = vsel %vm797_vm7, %v198_v63, %v167_v49  ;;  %v206_v11 = vsel %vm798_vm8, %v198_v63, %v168_v50  ;;  %218 = vst [vmem:[%s785_s5 + $0x18] sm:$0xff] %v202_v6  ;;  %v207_v14 = vsel %vm187_vm13, %v198_v63, %v169_v55  ;;  %v208_v15 = vsel %vm188_vm14, %v198_v63, %v170_v56 }
  0x1b   :  { %v209_v16 = vsel %vm189_vm0, %v198_v63, %v171_v57  ;;  %v210_v17 = vsel %vm190_vm1, %v198_v63, %v172_v58  ;;  %219 = vst [vmem:[%s785_s5 + $0x20] sm:$0xff] %v203_v7  ;;  %220 = vst [vmem:[%s785_s5 + $0x28] sm:$0xff] %v204_v8  ;;  %v211_v10 = vsel %vm191_vm12, %v198_v63, %v173_v60  ;;  %vm118_vm11 = vcmp.eq.s32.totalorder %v117_v27, 0 }
  0x1c   :  { %312 = vmatpush3.bf16.xpose.msra.mxu0 %v311_v20  ;;  %221 = vst [vmem:[%s785_s5 + $0x30] sm:$0xff] %v205_v9  ;;  %222 = vst [vmem:[%s785_s5 + $0x38] sm:$0xff] %v206_v11  ;;  %v212_v12 = vsel %vm192_vm9, %v198_v63, %v174_v61  ;;  %v213_v18 = vsel %vm193_vm10, %v198_v63, %v175_v62  ;;  %v214_v20 = vsel %vm194_vm2, %v198_v63, %v176_v0 }
  0x1d   :  { %313 = vmatprep.subr.bf16.mxu0 %v354_v3  ;;  %223 = vst [vmem:[%s785_s5 + $0x40] sm:$0xff] %v207_v14  ;;  %224 = vst [vmem:[%s785_s5 + $0x48] sm:$0xff] %v208_v15  ;;  %v314_v19 = vpack.c.bf16 %v32_v45, %v578_v40  ;;  %v320_v22 = vpack.c.bf16 %v36_v53, %v35_v52  ;;  %v323_v23 = vpack.c.bf16 %v38_v59, %v37_v54 }
  0x1e   :  { %225 = vst [vmem:[%s785_s5 + $0x50] sm:$0xff] %v209_v16  ;;  %226 = vst [vmem:[%s785_s5 + $0x58] sm:$0xff] %v210_v17 }
  0x1f   :  { %227 = vst [vmem:[%s785_s5 + $0x60] sm:$0xff] %v211_v10  ;;  %228 = vst [vmem:[%s785_s5 + $0x68] sm:$0xff] %v212_v12 }
  0x20   :  { %229 = vst [vmem:[%s785_s5 + $0x70] sm:$0xff] %v213_v18  ;;  %230 = vst [vmem:[%s785_s5 + $0x78] sm:$0xff] %v214_v20  ;;  %s357_s5 = smov 1  }
  0x24   :  { %315 = vmatpush3.bf16.xpose.msra.mxu0 %v314_v19 }
  0x25   :  { %316 = vmatprep.subr.bf16.mxu0 %v354_v3 }
  0x2c   :  { %318 = vmatpush3.bf16.xpose.msra.mxu0 %v317_v21 }
  0x2d   :  { %319 = vmatprep.subr.bf16.mxu0 %v354_v3 }
  0x34   :  { %321 = vmatpush3.bf16.xpose.msra.mxu0 %v320_v22 }
  0x35   :  { %322 = vmatprep.subr.bf16.mxu0 %v354_v3 }
  0x3c   :  { %324 = vmatpush3.bf16.xpose.msra.mxu0 %v323_v23 }
  0x43   :  { %299 = vmatmul.mubr.f32.vlgmr.msra.gmra.mrb[0].mxu0 %v442_v13 }
  0x95   :  { %v43_v26 = vpop.xlane.xlu0 %42 }
 0x116   :  { %v110_v24 = vpop.f32.mrb[0].mxu0 }
 0x117   :  { %v300_v25 = vpop.f32.mrb[1].mxu0  ;;  %114 = vrot.lane.b32.xlu0 %v110_v24, %s357_s5 }
 0x189   :  { %v115_v28 = vpop.permute.xlu0 %114 }
 0x18a   :  { %v119_v29 = vsel %vm118_vm11, %v43_v26, %v115_v28 }
 0x18b   :  { %v120_v30 = vmul.f32 100.0, %v119_v29 }
 0x18d   :  { %121 = vst [vmem:[#allocation3] sm:$0x3] %v120_v30 }
 0x18e   :  { %341 = shalt.err (!%p338_p4)
}
 0x18f   :  { %s342_s13 = scalar_lea.hbm %s784_s4, 32 }
 0x190   :  { %p343_p5 = scmp.ne.s32.totalorder %s784_s4, %s342_s13  ;;  %p346_p6 = scmp.lt.u32.totalorder %s342_s13, %s784_s4 }
 0x192   :  { %p348_p7 = pnand %p346_p6, %p343_p5 }
 0x194   :  { %351 = shalt.err (!%p348_p7)
}
 0x195   :  { %240 = dma.vmem_to_hbm [thread:$0]  %s238_s9, 32, %s784_s4, [#allocation4]  }
 0x196   :  { %352 = dma.done.wait [#allocation4], 32  }
 0x197   :  { %353 = vsyncadd [#allocation4], 4294967264 }
 0x198   :  { %248 = vsyncpa [#allocation4], 1 }

// kernel: _mocov2_forward.2
= control target key start
LH: loop header
LB: loop body
LE: loop exit
PB: predicated region body
PF: predicated region fallthrough
CT: control target
= control target key end

     0   :  { %s2331_s24 = smov 0   ;;  %s2555_s0 = inlined_call_operand.vmem [shape: bf16[2,2,1024], index: 0, kind: input, shape index: {}]   ;;  %s2556_s1 = inlined_call_operand.vmem [shape: bf16[2,1024,256], index: 1, kind: input, shape index: {}]   ;;  %s2557_s2 = inlined_call_operand.vmem [shape: bf16[2,256,128], index: 2, kind: input, shape index: {}]   ;;  %s2558_s3 = inlined_call_operand.vmem [shape: f32[2,1,128], index: 3, kind: input, shape index: {}]   ;;  %s2559_s4 = inlined_call_operand.vmem [shape: f32[2,1,128], index: 4, kind: input, shape index: {}]   ;;  %s2560_s5 = inlined_call_operand.vmem [shape: bf16[2,128,128], index: 5, kind: input, shape index: {}]   ;;  %s2561_s6 = inlined_call_operand.vmem [shape: f32[2,1,128], index: 6, kind: input, shape index: {}]   ;;  %s2562_s7 = inlined_call_operand.vmem [shape: f32[2,2,128], index: 7, kind: output, shape index: {}]  }
   0x1 LB: > { %s1814_s25 = sadd.s32 4294967295, %s2286_s24   ;;  %p1818_p0 = scmp.ge.s32.totalorder %s2286_s24, 1  ;;  %s2286_s24 = sphi %s2331_s24, %s17_s24  }
   0x2   : > { %p290_p1 = scmp.lt.s32.totalorder %s2286_s24, 3 }
   0x4   : > { %p291_p2 = pnand %p1818_p0, %p290_p1 }
   0x5   : > { %p344_p3 = scmp.lt.s32.totalorder (!%p291_p2), %s1814_s25, 1  ;;  %v2288_v7 = vmov (!%p291_p2), 1966171168   ;;  %v511_v9 = vlaneseq (!%p291_p2)  ;;  %vm2290_vm0 = vmmov (!%p291_p2), 0   ;;  %vm1538_vm1 = vcmask (!%p291_p2), 1041408  }
   0x6   : > { %294 = sbr.rel (%p291_p2) target bundleno = 1074 (0x432), region = 48  ;;  %v509_v8 = vunpack.c.l.s4 (!%p291_p2), %v2288_v7 }
   0x7   : > { %v512_v13 = vshrl.u32 (!%p291_p2), %v511_v9, 7 }
   0x8   : > { %v510_v12 = vunpack.c.0.s8 (!%p291_p2), %v509_v8 }
   0xa   : > { %v2362_v16 = vsub.s32 (!%p291_p2), %v510_v12, %v512_v13 }
   0xd   : > { %s2564_s25 = smov (!%p344_p3, %s1814_s25), 1 }
   0xe   : > { %s1984_s26 = sshll.u32 %s2564_s25, 10  ;;  %s1819_s30 = sshll.u32 %s2564_s25, 3 }
   0xf   : > { %s2345_s29 = scalar_lea.vmem %s2556_s1, %s1984_s26  ;;  %s347_s10 = scalar_lea.vmem %s2555_s0, %s1819_s30 }
  0x10   : > { %v2059_v0 = vld [vmem:[%s2345_s29 + $0x104] ss:$8 sps:$4 sm:$0xff]   ;;  %v2061_v1 = vld [vmem:[%s2345_s29 + $0x100] ss:$8 sps:$4 sm:$0xff]   ;;  %v2062_v2 = vld [vmem:[%s2345_s29 + $0x114] ss:$8 sps:$4 sm:$0xff]   ;;  %s360_s21 = scalar_lea.vmem %s2558_s3, %s2564_s25  ;;  %s363_s26 = scalar_lea.vmem %s2559_s4, %s2564_s25 }
  0x11   : > { %1245 = vmatprep.subr.bf16.mxu0 %v2059_v0  ;;  %v2064_v3 = vld [vmem:[%s2345_s29 + $0x110] ss:$8 sps:$4 sm:$0xff]   ;;  %v2065_v4 = vld [vmem:[%s2345_s29 + $0x124] ss:$8 sps:$4 sm:$0xff]   ;;  %v2067_v5 = vld [vmem:[%s2345_s29 + $0x120] ss:$8 sps:$4 sm:$0xff]  }
  0x12   : > { %1246 = vmatpush1.bf16.msra.mxu0 %v2061_v1  ;;  %v2068_v6 = vld [vmem:[%s2345_s29 + $0x134] ss:$8 sps:$4 sm:$0xff]   ;;  %v2070_v10 = vld [vmem:[%s2345_s29 + $0x130] ss:$8 sps:$4 sm:$0xff]   ;;  %v2071_v11 = vld [vmem:[%s2345_s29 + $0x144] ss:$8 sps:$4 sm:$0xff]  }
  0x13   : > { %1247 = vmatprep.subr.bf16.mxu0 %v2062_v2  ;;  %v2073_v14 = vld [vmem:[%s2345_s29 + $0x140] ss:$8 sps:$4 sm:$0xff]   ;;  %v2074_v15 = vld [vmem:[%s2345_s29 + $0x154] ss:$8 sps:$4 sm:$0xff]   ;;  %v2076_v17 = vld [vmem:[%s2345_s29 + $0x150] ss:$8 sps:$4 sm:$0xff]  }
  0x14   : > { %v2077_v18 = vld [vmem:[%s2345_s29 + $0x164] ss:$8 sps:$4 sm:$0xff]   ;;  %v2079_v22 = vld [vmem:[%s2345_s29 + $0x160] ss:$8 sps:$4 sm:$0xff]   ;;  %v2080_v23 = vld [vmem:[%s2345_s29 + $0x174] ss:$8 sps:$4 sm:$0xff]  }
  0x15   : > { %v377_v19 = vld [vmem:[%s347_s10] sm:$0xff]  ;;  %v2082_v28 = vld [vmem:[%s2345_s29 + $0x170] ss:$8 sps:$4 sm:$0xff]   ;;  %v2086_v32 = vld [vmem:[%s2345_s29 + $0x194] ss:$8 sps:$4 sm:$0xff]   ;;  %s1985_s11 = sshll.u32 %s2564_s25, 7 }
  0x16   : > { %1248 = vmatpush1.bf16.msra.mxu0 %v2064_v3  ;;  %v507_v20 = vcombine.high %v377_v19, %v377_v19  ;;  %v514_v21 = vrot.slane %v377_v19, %v2362_v16  ;;  %v2083_v29 = vld [vmem:[%s2345_s29 + $0x184] ss:$8 sps:$4 sm:$0xff]   ;;  %v2085_v31 = vld [vmem:[%s2345_s29 + $0x180] ss:$8 sps:$4 sm:$0xff]   ;;  %v2088_v33 = vld [vmem:[%s2345_s29 + $0x190] ss:$8 sps:$4 sm:$0xff]   ;;  %s2445_s14 = scalar_lea.vmem %s2557_s2, %s1985_s11 }
  0x17   : > { %1249 = vmatprep.subr.bf16.mxu0 %v2065_v4  ;;  %v2089_v34 = vld [vmem:[%s2345_s29 + $0x1a4] ss:$8 sps:$4 sm:$0xff]   ;;  %v2091_v35 = vld [vmem:[%s2345_s29 + $0x1a0] ss:$8 sps:$4 sm:$0xff]   ;;  %v2092_v36 = vld [vmem:[%s2345_s29 + $0x1b4] ss:$8 sps:$4 sm:$0xff]  }
  0x18   : > { %v522_v24 = vcombine.high %v514_v21, %v514_v21  ;;  %v2370_v25 = vrot.slane %v507_v20, %v2362_v16  ;;  %v2094_v37 = vld [vmem:[%s2345_s29 + $0x1b0] ss:$8 sps:$4 sm:$0xff]   ;;  %v2095_v38 = vld [vmem:[%s2345_s29 + $0x1c4] ss:$8 sps:$4 sm:$0xff]   ;;  %v2158_v40 = vld [vmem:[%s2345_s29] ss:$8 sps:$4 sm:$0xff]   ;;  %v2404_v55 = vrot.slane %v514_v21, %v2362_v16 }
  0x19   : > { %v2156_v39 = vld [vmem:[%s2345_s29 + $0x4] ss:$8 sps:$4 sm:$0xff]   ;;  %v2162_v41 = vld [vmem:[%s2345_s29 + $0x14] ss:$8 sps:$4 sm:$0xff]   ;;  %v2164_v42 = vld [vmem:[%s2345_s29 + $0x10] ss:$8 sps:$4 sm:$0xff]  }
  0x1a   : > { %1250 = vmatpush1.bf16.msra.mxu0 %v2067_v5  ;;  %v544_v26 = vrot.slane %v522_v24, %v2362_v16  ;;  %v2375_v27 = vrot.slane %v2370_v25, %v2362_v16  ;;  %1204 = vmatprep.subr.bf16.mxu1 %v2156_v39  ;;  %v2097_v43 = vld [vmem:[%s2345_s29 + $0x1c0] ss:$8 sps:$4 sm:$0xff]   ;;  %v2098_v44 = vld [vmem:[%s2345_s29 + $0x1d4] ss:$8 sps:$4 sm:$0xff]   ;;  %v2168_v45 = vld [vmem:[%s2345_s29 + $0x24] ss:$8 sps:$4 sm:$0xff]   ;;  %v523_v57 = vcombine.high %v2370_v25, %v2370_v25 }
  0x1b   : > { %1251 = vmatprep.subr.bf16.mxu0 %v2068_v6  ;;  %1205 = vmatpush1.bf16.msra.mxu1 %v2158_v40  ;;  %v2100_v46 = vld [vmem:[%s2345_s29 + $0x1d0] ss:$8 sps:$4 sm:$0xff]   ;;  %v2170_v47 = vld [vmem:[%s2345_s29 + $0x20] ss:$8 sps:$4 sm:$0xff]   ;;  %v2174_v48 = vld [vmem:[%s2345_s29 + $0x34] ss:$8 sps:$4 sm:$0xff]   ;;  %v552_v61 = vcombine.high %v2404_v55, %v2404_v55 }
  0x1c   : > { %v554_v30 = vcombine.high %v544_v26, %v544_v26  ;;  %1236 = vmatprep.mubr.bf16.mxu1 %v544_v26  ;;  %1206 = vmatprep.subr.bf16.mxu1 %v2162_v41  ;;  %v2101_v49 = vld [vmem:[%s2345_s29 + $0x1e4] ss:$8 sps:$4 sm:$0xff]   ;;  %v2103_v50 = vld [vmem:[%s2345_s29 + $0x1e0] ss:$8 sps:$4 sm:$0xff]   ;;  %v2176_v51 = vld [vmem:[%s2345_s29 + $0x30] ss:$8 sps:$4 sm:$0xff]   ;;  %v2417_v0 = vrot.slane %v523_v57, %v2362_v16 }
  0x1d   : > { %v2180_v52 = vld [vmem:[%s2345_s29 + $0x44] ss:$8 sps:$4 sm:$0xff]   ;;  %v2104_v53 = vld [vmem:[%s2345_s29 + $0x1f4] ss:$8 sps:$4 sm:$0xff]   ;;  %v2106_v54 = vld [vmem:[%s2345_s29 + $0x1f0] ss:$8 sps:$4 sm:$0xff]  }
  0x1e   : > { %1252 = vmatpush1.bf16.msra.mxu0 %v2070_v10  ;;  %1277 = vmatprep.mubr.bf16.mxu0 %v554_v30  ;;  %v2182_v56 = vld [vmem:[%s2345_s29 + $0x40] ss:$8 sps:$4 sm:$0xff]   ;;  %v2186_v58 = vld [vmem:[%s2345_s29 + $0x54] ss:$8 sps:$4 sm:$0xff]   ;;  %v2110_v59 = vld [vmem:[%s2345_s29 + $0x204] ss:$8 sps:$4 sm:$0xff]  }
  0x1f   : > { %1253 = vmatprep.subr.bf16.mxu0 %v2071_v11  ;;  %1207 = vmatpush1.bf16.msra.mxu1 %v2164_v42  ;;  %v2108_v60 = vld [vmem:[%s2345_s29 + $0x200] ss:$8 sps:$4 sm:$0xff]   ;;  %v2188_v62 = vld [vmem:[%s2345_s29 + $0x50] ss:$8 sps:$4 sm:$0xff]   ;;  %v2113_v63 = vld [vmem:[%s2345_s29 + $0x214] ss:$8 sps:$4 sm:$0xff]  }
  0x20   : > { %1208 = vmatprep.subr.bf16.mxu1 %v2168_v45  ;;  %v2192_v1 = vld [vmem:[%s2345_s29 + $0x64] ss:$8 sps:$4 sm:$0xff]   ;;  %v2111_v2 = vld [vmem:[%s2345_s29 + $0x210] ss:$8 sps:$4 sm:$0xff]   ;;  %v2194_v3 = vld [vmem:[%s2345_s29 + $0x60] ss:$8 sps:$4 sm:$0xff]  }
  0x21   : > { %v2198_v4 = vld [vmem:[%s2345_s29 + $0x74] ss:$8 sps:$4 sm:$0xff]   ;;  %v2116_v5 = vld [vmem:[%s2345_s29 + $0x224] ss:$8 sps:$4 sm:$0xff]   ;;  %v2114_v6 = vld [vmem:[%s2345_s29 + $0x220] ss:$8 sps:$4 sm:$0xff]  }
  0x22   : > { %1254 = vmatpush1.bf16.msra.mxu0 %v2073_v14  ;;  %v2200_v7 = vld [vmem:[%s2345_s29 + $0x70] ss:$8 sps:$4 sm:$0xff]   ;;  %v2204_v8 = vld [vmem:[%s2345_s29 + $0x84] ss:$8 sps:$4 sm:$0xff]   ;;  %v2119_v9 = vld [vmem:[%s2345_s29 + $0x234] ss:$8 sps:$4 sm:$0xff]  }
  0x23   : > { %1255 = vmatprep.subr.bf16.mxu0 %v2074_v15  ;;  %1209 = vmatpush1.bf16.msra.mxu1 %v2170_v47  ;;  %v2117_v10 = vld [vmem:[%s2345_s29 + $0x230] ss:$8 sps:$4 sm:$0xff]   ;;  %v2206_v11 = vld [vmem:[%s2345_s29 + $0x80] ss:$8 sps:$4 sm:$0xff]   ;;  %v2210_v12 = vld [vmem:[%s2345_s29 + $0x94] ss:$8 sps:$4 sm:$0xff]  }
  0x24   : > { %1210 = vmatprep.subr.bf16.mxu1 %v2174_v48  ;;  %v2122_v13 = vld [vmem:[%s2345_s29 + $0x244] ss:$8 sps:$4 sm:$0xff]   ;;  %v2120_v14 = vld [vmem:[%s2345_s29 + $0x240] ss:$8 sps:$4 sm:$0xff]   ;;  %v2212_v15 = vld [vmem:[%s2345_s29 + $0x90] ss:$8 sps:$4 sm:$0xff]  }
  0x25   : > { %v2216_v16 = vld [vmem:[%s2345_s29 + $0xa4] ss:$8 sps:$4 sm:$0xff]   ;;  %v2218_v19 = vld [vmem:[%s2345_s29 + $0xa0] ss:$8 sps:$4 sm:$0xff]   ;;  %v2222_v20 = vld [vmem:[%s2345_s29 + $0xb4] ss:$8 sps:$4 sm:$0xff]  }
  0x26   : > { %1256 = vmatpush1.bf16.msra.mxu0 %v2076_v17  ;;  %v2125_v17 = vld [vmem:[%s2345_s29 + $0x254] ss:$8 sps:$4 sm:$0xff]   ;;  %v2128_v21 = vld [vmem:[%s2345_s29 + $0x264] ss:$8 sps:$4 sm:$0xff]   ;;  %v2129_v26 = vld [vmem:[%s2345_s29 + $0x270] ss:$8 sps:$4 sm:$0xff]  }
  0x27   : > { %1257 = vmatprep.subr.bf16.mxu0 %v2077_v18  ;;  %1211 = vmatpush1.bf16.msra.mxu1 %v2176_v51  ;;  %v2123_v18 = vld [vmem:[%s2345_s29 + $0x250] ss:$8 sps:$4 sm:$0xff]   ;;  %v2228_v24 = vld [vmem:[%s2345_s29 + $0xc4] ss:$8 sps:$4 sm:$0xff]   ;;  %v2131_v25 = vld [vmem:[%s2345_s29 + $0x274] ss:$8 sps:$4 sm:$0xff]  }
  0x28   : > { %1212 = vmatprep.subr.bf16.mxu1 %v2180_v52  ;;  %v2134_v30 = vld [vmem:[%s2345_s29 + $0x284] ss:$8 sps:$4 sm:$0xff]   ;;  %v2248_v39 = vld [vmem:[%s2345_s29 + $0xf0] ss:$8 sps:$4 sm:$0xff]   ;;  %v2138_v40 = vld [vmem:[%s2345_s29 + $0x2a0] ss:$8 sps:$4 sm:$0xff]  }
  0x29   : > { %v2252_v41 = vld [vmem:[%s2445_s14 + $0x40] sm:$0xff]   ;;  %v2143_v42 = vld [vmem:[%s2345_s29 + $0x2b4] ss:$8 sps:$4 sm:$0xff]   ;;  %v2254_v45 = vld [vmem:[%s2445_s14 + $0x48] sm:$0xff]   ;;  %s1986_s15 = sshll.u32 %s2564_s25, 6  ;;  %s1826_s30 = sshll.u32 %s2564_s25, 1 }
  0x2a   : > { %1258 = vmatpush1.bf16.msra.mxu0 %v2079_v22  ;;  %v2126_v22 = vld [vmem:[%s2345_s29 + $0x260] ss:$8 sps:$4 sm:$0xff]   ;;  %v2257_v51 = vld [vmem:[%s2445_s14 + $0x10] sm:$0xff]   ;;  %s368_s18 = scalar_lea.vmem %s2560_s5, %s1986_s15  ;;  %s375_s10 = scalar_lea.vmem %s2562_s7, %s1826_s30 }
  0x2b   : > { %1259 = vmatprep.subr.bf16.mxu0 %v2080_v23  ;;  %1213 = vmatpush1.bf16.msra.mxu1 %v2182_v56  ;;  %v2224_v23 = vld [vmem:[%s2345_s29 + $0xb0] ss:$8 sps:$4 sm:$0xff]   ;;  %v2255_v47 = vld [vmem:[%s2445_s14 + $0x8] sm:$0xff]   ;;  %v2260_v57 = vld [vmem:[%s2445_s14 + $0x60] sm:$0xff]  }
  0x2c   : > { %1214 = vmatprep.subr.bf16.mxu1 %v2186_v58  ;;  %v2144_v48 = vld [vmem:[%s2345_s29 + $0x2c0] ss:$8 sps:$4 sm:$0xff]   ;;  %v2147_v52 = vld [vmem:[%s2345_s29 + $0x2d0] ss:$8 sps:$4 sm:$0xff]   ;;  %v2155_v58 = vld [vmem:[%s2345_s29 + $0x2f4] ss:$8 sps:$4 sm:$0xff]  }
  0x2d   : > { %v2150_v56 = vld [vmem:[%s2345_s29 + $0x2e0] ss:$8 sps:$4 sm:$0xff]  }
  0x2e   : > { %1260 = vmatpush1.bf16.msra.mxu0 %v2082_v28  ;;  %v2230_v28 = vld [vmem:[%s2345_s29 + $0xc0] ss:$8 sps:$4 sm:$0xff]  }
  0x2f   : > { %1261 = vmatprep.subr.bf16.mxu0 %v2083_v29  ;;  %1215 = vmatpush1.bf16.msra.mxu1 %v2188_v62  ;;  %v2234_v29 = vld [vmem:[%s2345_s29 + $0xd4] ss:$8 sps:$4 sm:$0xff]   ;;  %v2161_v62 = vld [vmem:[%s2345_s29 + $0x304] ss:$8 sps:$4 sm:$0xff]  }
  0x30   : > { %1216 = vmatprep.subr.bf16.mxu1 %v2192_v1  ;;  %v2159_v1 = vld [vmem:[%s2345_s29 + $0x300] ss:$8 sps:$4 sm:$0xff]  }
  0x32   : > { %1262 = vmatpush1.bf16.msra.mxu0 %v2085_v31  ;;  %v2132_v31 = vld [vmem:[%s2345_s29 + $0x280] ss:$8 sps:$4 sm:$0xff]  }
  0x33   : > { %1263 = vmatprep.subr.bf16.mxu0 %v2086_v32  ;;  %1217 = vmatpush1.bf16.msra.mxu1 %v2194_v3  ;;  %v2137_v32 = vld [vmem:[%s2345_s29 + $0x294] ss:$8 sps:$4 sm:$0xff]  }
  0x34   : > { %1218 = vmatprep.subr.bf16.mxu1 %v2198_v4  ;;  %v2167_v3 = vld [vmem:[%s2345_s29 + $0x314] ss:$8 sps:$4 sm:$0xff]   ;;  %v2165_v4 = vld [vmem:[%s2345_s29 + $0x310] ss:$8 sps:$4 sm:$0xff]  }
  0x36   : > { %1264 = vmatpush1.bf16.msra.mxu0 %v2088_v33  ;;  %v2236_v33 = vld [vmem:[%s2345_s29 + $0xd0] ss:$8 sps:$4 sm:$0xff]  }
  0x37   : > { %1265 = vmatprep.subr.bf16.mxu0 %v2089_v34  ;;  %1219 = vmatpush1.bf16.msra.mxu1 %v2200_v7  ;;  %v2240_v34 = vld [vmem:[%s2345_s29 + $0xe4] ss:$8 sps:$4 sm:$0xff]   ;;  %v2177_v7 = vld [vmem:[%s2345_s29 + $0x330] ss:$8 sps:$4 sm:$0xff]  }
  0x38   : > { %1220 = vmatprep.subr.bf16.mxu1 %v2204_v8  ;;  %v2185_v8 = vld [vmem:[%s2345_s29 + $0x344] ss:$8 sps:$4 sm:$0xff]  }
  0x3a   : > { %1266 = vmatpush1.bf16.msra.mxu0 %v2091_v35  ;;  %v2242_v35 = vld [vmem:[%s2345_s29 + $0xe0] ss:$8 sps:$4 sm:$0xff]  }
  0x3b   : > { %1267 = vmatprep.subr.bf16.mxu0 %v2092_v36  ;;  %1221 = vmatpush1.bf16.msra.mxu1 %v2206_v11  ;;  %v2135_v36 = vld [vmem:[%s2345_s29 + $0x290] ss:$8 sps:$4 sm:$0xff]  }
  0x3c   : > { %1222 = vmatprep.subr.bf16.mxu1 %v2210_v12  ;;  %v2189_v11 = vld [vmem:[%s2345_s29 + $0x350] ss:$8 sps:$4 sm:$0xff]   ;;  %v2197_v12 = vld [vmem:[%s2345_s29 + $0x364] ss:$8 sps:$4 sm:$0xff]  }
  0x3e   : > { %1268 = vmatpush1.bf16.msra.mxu0 %v2094_v37  ;;  %v2246_v37 = vld [vmem:[%s2345_s29 + $0xf4] ss:$8 sps:$4 sm:$0xff]  }
  0x3f   : > { %1269 = vmatprep.subr.bf16.mxu0 %v2095_v38  ;;  %1223 = vmatpush1.bf16.msra.mxu1 %v2212_v15  ;;  %v2140_v38 = vld [vmem:[%s2345_s29 + $0x2a4] ss:$8 sps:$4 sm:$0xff]   ;;  %v2201_v15 = vld [vmem:[%s2345_s29 + $0x370] ss:$8 sps:$4 sm:$0xff]  }
  0x40   : > { %1224 = vmatprep.subr.bf16.mxu1 %v2216_v16  ;;  %v2209_v16 = vld [vmem:[%s2345_s29 + $0x384] ss:$8 sps:$4 sm:$0xff]  }
  0x42   : > { %1270 = vmatpush1.bf16.msra.mxu0 %v2097_v43  ;;  %v2253_v43 = vld [vmem:[%s2445_s14] sm:$0xff]  }
  0x43   : > { %1271 = vmatprep.subr.bf16.mxu0 %v2098_v44  ;;  %1225 = vmatpush1.bf16.msra.mxu1 %v2218_v19  ;;  %v2141_v44 = vld [vmem:[%s2345_s29 + $0x2b0] ss:$8 sps:$4 sm:$0xff]  }
  0x44   : > { %1226 = vmatprep.subr.bf16.mxu1 %v2222_v20  ;;  %v2213_v19 = vld [vmem:[%s2345_s29 + $0x390] ss:$8 sps:$4 sm:$0xff]   ;;  %v2221_v20 = vld [vmem:[%s2345_s29 + $0x3a4] ss:$8 sps:$4 sm:$0xff]  }
  0x46   : > { %1272 = vmatpush1.bf16.msra.mxu0 %v2100_v46  ;;  %v2146_v46 = vld [vmem:[%s2345_s29 + $0x2c4] ss:$8 sps:$4 sm:$0xff]  }
  0x47   : > { %1273 = vmatprep.subr.bf16.mxu0 %v2101_v49  ;;  %1227 = vmatpush1.bf16.msra.mxu1 %v2224_v23  ;;  %v2256_v49 = vld [vmem:[%s2445_s14 + $0x50] sm:$0xff]  }
  0x48   : > { %1228 = vmatprep.subr.bf16.mxu1 %v2228_v24  ;;  %v2225_v23 = vld [vmem:[%s2345_s29 + $0x3b0] ss:$8 sps:$4 sm:$0xff]   ;;  %v2233_v24 = vld [vmem:[%s2345_s29 + $0x3c4] ss:$8 sps:$4 sm:$0xff]  }
  0x4a   : > { %1274 = vmatpush1.bf16.msra.mxu0 %v2103_v50  ;;  %v2149_v50 = vld [vmem:[%s2345_s29 + $0x2d4] ss:$8 sps:$4 sm:$0xff]  }
  0x4b   : > { %1275 = vmatprep.subr.bf16.mxu0 %v2104_v53  ;;  %1229 = vmatpush1.bf16.msra.mxu1 %v2230_v28  ;;  %v2258_v53 = vld [vmem:[%s2445_s14 + $0x58] sm:$0xff]  }
  0x4c   : > { %1230 = vmatprep.subr.bf16.mxu1 %v2234_v29  ;;  %v2237_v28 = vld [vmem:[%s2345_s29 + $0x3d0] ss:$8 sps:$4 sm:$0xff]   ;;  %v2245_v29 = vld [vmem:[%s2345_s29 + $0x3e4] ss:$8 sps:$4 sm:$0xff]  }
  0x4e   : > { %1276 = vmatpush1.bf16.msra.mxu0 %v2106_v54  ;;  %v2152_v54 = vld [vmem:[%s2345_s29 + $0x2e4] ss:$8 sps:$4 sm:$0xff]  }
  0x4f   : > { %1286 = vmatprep.subr.bf16.mxu0 %v2110_v59  ;;  %1231 = vmatpush1.bf16.msra.mxu1 %v2236_v33  ;;  %v2261_v59 = vld [vmem:[%s2445_s14 + $0x20] sm:$0xff]   ;;  %v553_v33 = vcombine.high %v2375_v27, %v2375_v27 }
  0x50   : > { %1232 = vmatprep.subr.bf16.mxu1 %v2240_v34  ;;  %v2264_v34 = vld [vmem:[%s2445_s14 + $0x70] sm:$0xff]  }
  0x51   : > { %1278 = vmatmul.mubr.bf16.vlgmr.msra.gmra.mrb[0].mxu0 %v552_v61  ;;  %v2262_v61 = vld [vmem:[%s2445_s14 + $0x68] sm:$0xff]  }
  0x52   : > { %1287 = vmatpush1.bf16.msra.mxu0 %v2108_v60  ;;  %1318 = vmatprep.mubr.bf16.mxu0 %v2417_v0  ;;  %v2153_v60 = vld [vmem:[%s2345_s29 + $0x2f0] ss:$8 sps:$4 sm:$0xff]  }
  0x53   : > { %1288 = vmatprep.subr.bf16.mxu0 %v2113_v63  ;;  %1233 = vmatpush1.bf16.msra.mxu1 %v2242_v35  ;;  %v2263_v63 = vld [vmem:[%s2445_s14 + $0x28] sm:$0xff]   ;;  %v2265_v35 = vld [vmem:[%s2445_s14 + $0x30] sm:$0xff]  }
  0x54   : > { %1234 = vmatprep.subr.bf16.mxu1 %v2246_v37  ;;  %v2267_v37 = vld [vmem:[%s2445_s14 + $0x38] sm:$0xff]  }
  0x56   : > { %1289 = vmatpush1.bf16.msra.mxu0 %v2111_v2  ;;  %v555_v2 = vcombine.high %v2417_v0, %v2417_v0  ;;  %v2179_v0 = vld [vmem:[%s2345_s29 + $0x334] ss:$8 sps:$4 sm:$0xff]  }
  0x57   : > { %1290 = vmatprep.subr.bf16.mxu0 %v2116_v5  ;;  %1235 = vmatpush1.bf16.msra.mxu1 %v2248_v39  ;;  %v2173_v5 = vld [vmem:[%s2345_s29 + $0x324] ss:$8 sps:$4 sm:$0xff]  }
  0x58   : > { %1987 = vmatprep.subr.bf16.mxu1 %v2252_v41 }
  0x5a   : > { %1291 = vmatpush1.bf16.msra.mxu0 %v2114_v6  ;;  %1237 = vmatmul.mubr.bf16.vlgmr.msra.gmra.mrb[0].mxu1 %v2404_v55  ;;  %v2259_v55 = vld [vmem:[%s2445_s14 + $0x18] sm:$0xff]   ;;  %v2171_v6 = vld [vmem:[%s2345_s29 + $0x320] ss:$8 sps:$4 sm:$0xff]  }
  0x5b   : > { %1292 = vmatprep.subr.bf16.mxu0 %v2119_v9  ;;  %1988 = vmatpush3.bf16.msra.mxu1 %v2253_v43  ;;  %v2183_v9 = vld [vmem:[%s2345_s29 + $0x340] ss:$8 sps:$4 sm:$0xff]  }
  0x5c   : > { %1989 = vmatprep.subr.bf16.mxu1 %v2254_v45 }
  0x5e   : > { %1293 = vmatpush1.bf16.msra.mxu0 %v2117_v10  ;;  %v2191_v10 = vld [vmem:[%s2345_s29 + $0x354] ss:$8 sps:$4 sm:$0xff]  }
  0x5f   : > { %1294 = vmatprep.subr.bf16.mxu0 %v2122_v13  ;;  %1990 = vmatpush3.bf16.msra.mxu1 %v2255_v47  ;;  %v2195_v13 = vld [vmem:[%s2345_s29 + $0x360] ss:$8 sps:$4 sm:$0xff]  }
  0x60   : > { %1991 = vmatprep.subr.bf16.mxu1 %v2256_v49  ;;  %v2268_v49 = vld [vmem:[%s368_s18] sm:$0xff]  }
  0x62   : > { %1295 = vmatpush1.bf16.msra.mxu0 %v2120_v14  ;;  %v2203_v14 = vld [vmem:[%s2345_s29 + $0x374] ss:$8 sps:$4 sm:$0xff]  }
  0x63   : > { %1296 = vmatprep.subr.bf16.mxu0 %v2125_v17  ;;  %1992 = vmatpush3.bf16.msra.mxu1 %v2257_v51  ;;  %v2207_v17 = vld [vmem:[%s2345_s29 + $0x380] ss:$8 sps:$4 sm:$0xff]  }
  0x64   : > { %1993 = vmatprep.subr.bf16.mxu1 %v2258_v53  ;;  %v2269_v51 = vld [vmem:[%s368_s18 + $0x8] sm:$0xff]   ;;  %v2271_v53 = vld [vmem:[%s368_s18 + $0x18] sm:$0xff]  }
  0x66   : > { %1297 = vmatpush1.bf16.msra.mxu0 %v2123_v18  ;;  %v2215_v18 = vld [vmem:[%s2345_s29 + $0x394] ss:$8 sps:$4 sm:$0xff]  }
  0x67   : > { %1298 = vmatprep.subr.bf16.mxu0 %v2128_v21  ;;  %1994 = vmatpush3.bf16.msra.mxu1 %v2259_v55  ;;  %v2219_v21 = vld [vmem:[%s2345_s29 + $0x3a0] ss:$8 sps:$4 sm:$0xff]  }
  0x68   : > { %1995 = vmatprep.subr.bf16.mxu1 %v2260_v57  ;;  %v2273_v55 = vld [vmem:[%s368_s18 + $0x28] sm:$0xff]   ;;  %v2275_v57 = vld [vmem:[%s368_s18 + $0x38] sm:$0xff]  }
  0x6a   : > { %1299 = vmatpush1.bf16.msra.mxu0 %v2126_v22  ;;  %v2227_v22 = vld [vmem:[%s2345_s29 + $0x3b4] ss:$8 sps:$4 sm:$0xff]  }
  0x6b   : > { %1300 = vmatprep.subr.bf16.mxu0 %v2131_v25  ;;  %1996 = vmatpush3.bf16.msra.mxu1 %v2261_v59  ;;  %v2231_v25 = vld [vmem:[%s2345_s29 + $0x3c0] ss:$8 sps:$4 sm:$0xff]  }
  0x6c   : > { %1997 = vmatprep.subr.bf16.mxu1 %v2262_v61 }
  0x6e   : > { %1301 = vmatpush1.bf16.msra.mxu0 %v2129_v26  ;;  %v2239_v26 = vld [vmem:[%s2345_s29 + $0x3d4] ss:$8 sps:$4 sm:$0xff]  }
  0x6f   : > { %1302 = vmatprep.subr.bf16.mxu0 %v2134_v30  ;;  %1998 = vmatpush3.bf16.msra.mxu1 %v2263_v63  ;;  %v2243_v30 = vld [vmem:[%s2345_s29 + $0x3e0] ss:$8 sps:$4 sm:$0xff]  }
  0x70   : > { %1999 = vmatprep.subr.bf16.mxu1 %v2264_v34 }
  0x72   : > { %1303 = vmatpush1.bf16.msra.mxu0 %v2132_v31  ;;  %v2251_v31 = vld [vmem:[%s2345_s29 + $0x3f4] ss:$8 sps:$4 sm:$0xff]  }
  0x73   : > { %1304 = vmatprep.subr.bf16.mxu0 %v2137_v32  ;;  %v2249_v32 = vld [vmem:[%s2345_s29 + $0x3f0] ss:$8 sps:$4 sm:$0xff]   ;;  %2000 = vmatpush3.bf16.msra.mxu1 %v2265_v35  ;;  %s371_s29 = scalar_lea.vmem %s2561_s6, %s2564_s25 }
  0x76   : > { %1305 = vmatpush1.bf16.msra.mxu0 %v2135_v36  ;;  %v2266_v36 = vld [vmem:[%s2445_s14 + $0x78] sm:$0xff]  }
  0x77   : > { %1306 = vmatprep.subr.bf16.mxu0 %v2140_v38  ;;  %2001 = vmatprep.subr.bf16.mxu1 %v2266_v36 }
  0x78   : > { %2002 = vmatpush3.bf16.msra.mxu1 %v2267_v37 }
  0x7a   : > { %1307 = vmatpush1.bf16.msra.mxu0 %v2138_v40 }
  0x7b   : > { %1308 = vmatprep.subr.bf16.mxu0 %v2143_v42 }
  0x7e   : > { %1309 = vmatpush1.bf16.msra.mxu0 %v2141_v44 }
  0x7f   : > { %1310 = vmatprep.subr.bf16.mxu0 %v2146_v46 }
  0x82   : > { %1311 = vmatpush1.bf16.msra.mxu0 %v2144_v48 }
  0x83   : > { %1312 = vmatprep.subr.bf16.mxu0 %v2149_v50  ;;  %v2289_v50 = vmov 0.0  }
  0x84   : > { %2018 = vmatprep.subr.bf16.mxu1 %v2289_v50 }
  0x86   : > { %1313 = vmatpush1.bf16.msra.mxu0 %v2147_v52  ;;  %v2270_v52 = vld [vmem:[%s368_s18 + $0x10] sm:$0xff]  }
  0x87   : > { %1314 = vmatprep.subr.bf16.mxu0 %v2152_v54  ;;  %v2272_v54 = vld [vmem:[%s368_s18 + $0x20] sm:$0xff]  }
  0x8a   : > { %1315 = vmatpush1.bf16.msra.mxu0 %v2150_v56  ;;  %v2274_v56 = vld [vmem:[%s368_s18 + $0x30] sm:$0xff]  }
  0x8b   : > { %1316 = vmatprep.subr.bf16.mxu0 %v2155_v58 }
  0x8e   : > { %1317 = vmatpush1.bf16.msra.mxu0 %v2153_v60 }
  0x8f   : > { %1327 = vmatprep.subr.bf16.mxu0 %v2161_v62 }
  0x91   : > { %1319 = vmatmul.mubr.bf16.vlgmr.msra.gmra.mrb[0].mxu0 %v2375_v27 }
  0x92   : > { %1328 = vmatpush1.bf16.msra.mxu0 %v2159_v1  ;;  %1359 = vmatprep.mubr.bf16.mxu0 %v555_v2 }
  0x93   : > { %1329 = vmatprep.subr.bf16.mxu0 %v2167_v3 }
  0x96   : > { %1330 = vmatpush1.bf16.msra.mxu0 %v2165_v4 }
  0x97   : > { %1331 = vmatprep.subr.bf16.mxu0 %v2173_v5 }
  0x9a   : > { %1332 = vmatpush1.bf16.msra.mxu0 %v2171_v6 }
  0x9b   : > { %1333 = vmatprep.subr.bf16.mxu0 %v2179_v0 }
  0x9e   : > { %1334 = vmatpush1.bf16.msra.mxu0 %v2177_v7 }
  0x9f   : > { %1335 = vmatprep.subr.bf16.mxu0 %v2185_v8 }
  0xa2   : > { %1336 = vmatpush1.bf16.msra.mxu0 %v2183_v9 }
  0xa3   : > { %1337 = vmatprep.subr.bf16.mxu0 %v2191_v10 }
  0xa6   : > { %1338 = vmatpush1.bf16.msra.mxu0 %v2189_v11 }
  0xa7   : > { %1339 = vmatprep.subr.bf16.mxu0 %v2197_v12 }
  0xaa   : > { %1340 = vmatpush1.bf16.msra.mxu0 %v2195_v13 }
  0xab   : > { %1341 = vmatprep.subr.bf16.mxu0 %v2203_v14 }
  0xae   : > { %1342 = vmatpush1.bf16.msra.mxu0 %v2201_v15 }
  0xaf   : > { %1343 = vmatprep.subr.bf16.mxu0 %v2209_v16 }
  0xb2   : > { %1344 = vmatpush1.bf16.msra.mxu0 %v2207_v17 }
  0xb3   : > { %1345 = vmatprep.subr.bf16.mxu0 %v2215_v18 }
  0xb6   : > { %1346 = vmatpush1.bf16.msra.mxu0 %v2213_v19  ;;  %v1971_v19 = vld [vmem:[%s360_s21] ss:$0 sm:$0xff] }
  0xb7   : > { %1347 = vmatprep.subr.bf16.mxu0 %v2221_v20 }
  0xba   : > { %1348 = vmatpush1.bf16.msra.mxu0 %v2219_v21  ;;  %v1972_v21 = vld [vmem:[%s363_s26] ss:$0 sm:$0xff] }
  0xbb   : > { %1349 = vmatprep.subr.bf16.mxu0 %v2227_v22 }
  0xbe   : > { %1350 = vmatpush1.bf16.msra.mxu0 %v2225_v23 }
  0xbf   : > { %1351 = vmatprep.subr.bf16.mxu0 %v2233_v24 }
  0xc2   : > { %1352 = vmatpush1.bf16.msra.mxu0 %v2231_v25 }
  0xc3   : > { %1353 = vmatprep.subr.bf16.mxu0 %v2239_v26  ;;  %v1973_v26 = vld [vmem:[%s371_s29] ss:$0 sm:$0xff] }
  0xc6   : > { %1354 = vmatpush1.bf16.msra.mxu0 %v2237_v28 }
  0xc7   : > { %1355 = vmatprep.subr.bf16.mxu0 %v2245_v29 }
  0xca   : > { %1356 = vmatpush1.bf16.msra.mxu0 %v2243_v30 }
  0xcb   : > { %1357 = vmatprep.subr.bf16.mxu0 %v2251_v31 }
  0xce   : > { %1358 = vmatpush1.bf16.msra.mxu0 %v2249_v32 }
  0xd1   : > { %1360 = vmatmul.mubr.bf16.vlgmr.msra.gmra.mrb[0].mxu0 %v553_v33 }
 0x12d   : > { %v1238_v38 = vpop.f32.mrb[0].mxu1 }
 0x12e   : > { %v1240_v39 = vpop.f32.mrb[1].mxu1 }
 0x12f   : > { %v1242_v40 = vpop.f32.mrb[2].mxu1 }
 0x130   : > { %v1243_v41 = vpop.f32.mrb[3].mxu1 }
 0x1a4   : > { %v1361_v42 = vpop.f32.mrb[0].mxu0 }
 0x1a5   : > { %v2038_v43 = vadd.f32 %v1361_v42, %v1238_v38  ;;  %v1363_v44 = vpop.f32.mrb[1].mxu0 }
 0x1a6   : > { %v2039_v45 = vadd.f32 %v1363_v44, %v1240_v39  ;;  %v1365_v27 = vpop.f32.mrb[2].mxu0 }
 0x1a7   : > { %v1366_v46 = vpop.f32.mrb[3].mxu0  ;;  %v1368_v48 = vpack.c.bf16 %v2038_v43, %v2038_v43 }
 0x1a8   : > { %v1369_v47 = vpack.c.bf16 %v2039_v45, %v2039_v45 }
 0x1aa   : > { %1530 = vmatprep.mubr.bf16.mxu1 %v1369_v47 }
 0x1ab   : > { %1531 = vmatmul.mubr.bf16.vlgmr.msra.gmra.mrb[4].mxu1 %v1368_v48 }
 0x1ac   : > { %2019 = vmatpush3.bf16.msra.mxu1 %v2268_v49  ;;  %2034 = vmatprep.mubr.msk.bf16.mxu1 %vm2290_vm0, %v2289_v50 }
 0x1ad   : > { %2020 = vmatprep.subr.bf16.mxu1 %v2289_v50 }
 0x1b0   : > { %2021 = vmatpush3.bf16.msra.mxu1 %v2269_v51 }
 0x1b1   : > { %2022 = vmatprep.subr.bf16.mxu1 %v2289_v50 }
 0x1b4   : > { %2023 = vmatpush3.bf16.msra.mxu1 %v2270_v52 }
 0x1b5   : > { %2024 = vmatprep.subr.bf16.mxu1 %v2289_v50 }
 0x1b8   : > { %2025 = vmatpush3.bf16.msra.mxu1 %v2271_v53 }
 0x1b9   : > { %2026 = vmatprep.subr.bf16.mxu1 %v2289_v50 }
 0x1bc   : > { %2027 = vmatpush3.bf16.msra.mxu1 %v2272_v54 }
 0x1bd   : > { %2028 = vmatprep.subr.bf16.mxu1 %v2289_v50 }
 0x1c0   : > { %2029 = vmatpush3.bf16.msra.mxu1 %v2273_v55 }
 0x1c1   : > { %2030 = vmatprep.subr.bf16.mxu1 %v2289_v50 }
 0x1c4   : > { %2031 = vmatpush3.bf16.msra.mxu1 %v2274_v56 }
 0x1c5   : > { %2032 = vmatprep.subr.bf16.mxu1 %v2289_v50 }
 0x1c8   : > { %2033 = vmatpush3.bf16.msra.mxu1 %v2275_v57 }
 0x27e   : > { %v2003_v58 = vpop.f32.mrb[4].mxu1 }
 0x27f   : > { %v2004_v59 = vpop.f32.mrb[5].mxu1 }
 0x280   : > { %v2005_v60 = vadd.f32 %v2004_v59, %v2003_v58  ;;  %v2006_v61 = vpop.f32.mrb[6].mxu1 }
 0x281   : > { %v2007_v62 = vpop.f32.mrb[7].mxu1 }
 0x282   : > { %v1539_v63 = vsel %vm1538_vm1, %v2005_v60, 0.0 }
 0x283   : > { %v1540_v1 = vrot.slane %v1539_v63, 4 }
 0x285   : > { %v1541_v2 = vadd.f32 %v1540_v1, %v1539_v63 }
 0x287   : > { %v1542_v3 = vrot.slane %v1541_v2, 2 }
 0x289   : > { %v1543_v4 = vadd.f32 %v1542_v3, %v1541_v2 }
 0x28b   : > { %v1544_v5 = vrot.slane %v1543_v4, 1 }
 0x28d   : > { %v1545_v6 = vadd.f32 %v1544_v5, %v1543_v4 }
 0x28f   : > { %v1547_v0 = vmul.f32 0.5, %v1545_v6 }
 0x291   : > { %v1548_v7 = vsub.f32 %v2005_v60, %v1547_v0 }
 0x293   : > { %v1549_v8 = vmul.f32 %v1548_v7, %v1548_v7 }
 0x295   : > { %v1550_v9 = vsel %vm1538_vm1, %v1549_v8, 0.0 }
 0x296   : > { %v1551_v10 = vrot.slane %v1550_v9, 4 }
 0x298   : > { %v1552_v11 = vadd.f32 %v1551_v10, %v1550_v9 }
 0x29a   : > { %v1553_v12 = vrot.slane %v1552_v11, 2 }
 0x29c   : > { %v1554_v13 = vadd.f32 %v1553_v12, %v1552_v11 }
 0x29e   : > { %v1555_v14 = vrot.slane %v1554_v13, 1 }
 0x2a0   : > { %v1556_v15 = vadd.f32 %v1555_v14, %v1554_v13 }
 0x2a2   : > { %v1557_v16 = vmul.f32 0.5, %v1556_v15 }
 0x2a4   : > { %v1558_v17 = vadd.f32 1e-05, %v1557_v16 }
 0x2a6   : > { %2276 = vrsqrt.f32 %v1558_v17 }
 0x2b0   : > { %v2277_v18 = vpop.eup %2276 }
 0x2b1   : > { %v1560_v20 = vmul.f32 %v2277_v18, %v1548_v7 }
 0x2b3   : > { %v1568_v22 = vmul.f32 %v1971_v19, %v1560_v20 }
 0x2b5   : > { %v1576_v23 = vadd.f32 %v1972_v21, %v1568_v22 }
 0x2b7   : > { %v1577_v24 = vmax.f32 %v1576_v23, 0.0 }
 0x2b9   : > { %v1578_v25 = vpack.c.bf16 %v1577_v24, %v1577_v24 }
 0x2bb   : > { %2035 = vmatmul.mubr.bf16.vlgmr.msra.gmra.mrb[8].mxu1 %v1578_v25 }
 0x38e   : > { %v1684_v28 = vpop.f32.mrb[8].mxu1 }
 0x38f   : > { %v1685_v29 = vadd.f32 %v1973_v26, %v1684_v28  ;;  %v2036_v30 = vpop.f32.mrb[9].mxu1 }
 0x390   : > { %v1687_v31 = vpop.f32.mrb[10].mxu1 }
 0x391   : > { %v2037_v32 = vpop.f32.mrb[11].mxu1  ;;  %v1690_v33 = vmul.f32 %v1685_v29, %v1685_v29 }
 0x393   : > { %v1691_v34 = vsel %vm1538_vm1, %v1690_v33, 0.0 }
 0x394   : > { %1692 = vadd.xlane.f32.xlu0 %v1691_v34 }
 0x421   : > { %v1693_v35 = vpop.xlane.xlu0 %1692 }
 0x422   : > { %v1694_v36 = vmax.f32 %v1693_v35, 1e-24 }
 0x424   : > { %2278 = vrsqrt.f32 %v1694_v36 }
 0x42e   : > { %v2279_v37 = vpop.eup %2278 }
 0x42f   : > { %v1696_v38 = vmul.f32 %v2279_v37, %v1685_v29 }
 0x431   : > { %1697 = vst [vmem:[%s375_s10] sm:$0x3] %v1696_v38 }
 0x432 PF: > { %s17_s24 = sadd.s32 1, %s2286_s24  }
 0x433   : > { %p14_p4 = scmp.ge.s32.totalorder %s17_s24, 4  }
 0x435   :  { %16 = sbr.rel (!%p14_p4) target bundleno = 1 (0x1), region = 96 }

</bundles_post_ra>
